<compile_context>
chip_gen: v6e
topology: v6e:2x2x1
jax: 0.10.0
libtpu: 0.0.40
codegen_flags: <defaults>
</compile_context>

<pallas_src>
import jax
import jax.numpy as jnp
from jax.experimental import pallas as pl
from jax.experimental.pallas import tpu as pltpu

LANE = 128                                # lane width (last vreg dim)
_KERNEL_MIN_ELEMS = 8 * 1024              # below this, pallas_call is pure overhead
_BLOCK_BYTES_TARGET = 2 * 1024 * 1024     # ~2 MiB per block
_VMEM_LIMIT_BYTES = 32 * 1024 * 1024      # 4 x block (in+out double-buffered) = 1/4 of this
_WIDTH_CANDIDATES = (4096, 2048, 1024, 512, 256, 128)


def _min_sublane(dtype):
    """Native sublane packing: 8 for 32-bit, 16 for 16-bit, 32 for 8-bit."""
    bits = jnp.dtype(dtype).itemsize * 8
    return max(8, 256 // bits)


def _pick_width(total, sublane):
    """Widest lane-dense width (multiple of 128) that exactly divides total."""
    for w in _WIDTH_CANDIDATES:
        if total % w == 0 and (total // w) >= sublane:
            return w
    return None


def _pick_row_tile(rows, sublane, width, itemsize):
    """Largest sublane-aligned divisor of `rows` within the VMEM block budget.

    Also caps the tile so the grid has >= 2 blocks whenever possible, letting
    v7x's two TensorCores split the 'parallel' axis.
    """
    if rows % sublane != 0:
        # Full-dim block is always a legal tile (single grid step).
        return rows
    max_by_bytes = _BLOCK_BYTES_TARGET // (width * itemsize)
    max_by_bytes = max(sublane, (max_by_bytes // sublane) * sublane)
    cap = min(rows, max_by_bytes)
    if rows >= 2 * sublane:
        # Leave at least 2 blocks for megacore sharding.
        cap = min(cap, max(sublane, ((rows // 2) // sublane) * sublane))
    t = max(sublane, (cap // sublane) * sublane)
    while t >= sublane:
        if rows % t == 0:
            return t
        t -= sublane
    return rows


def _base_component_kernel(t_ref, out_ref):
    # Abstract base contract: component forecast with the same dims as t.
    # TODO(synk): forward() is @abstractmethod in PyTorch; concrete subclasses
    #             override this body with real component math. Base -> identity.
    out_ref[...] = t_ref[...]


def _identity_copy_2d(x2d, row_tile, donate=False):
    rows, width = x2d.shape
    grid = (rows // row_tile,)
    kwargs = {}
    if donate:
        # Only beneficial when the caller donates x2d/t; otherwise XLA inserts
        # a defensive copy (an extra HBM pass), so default is off.
        kwargs["input_output_aliases"] = {0: 0}
    return pl.pallas_call(
        _base_component_kernel,
        out_shape=jax.ShapeDtypeStruct((rows, width), x2d.dtype),
        grid=grid,
        in_specs=[pl.BlockSpec((row_tile, width), lambda i: (i, 0))],
        out_specs=pl.BlockSpec((row_tile, width), lambda i: (i, 0)),
        compiler_params=pltpu.CompilerParams(
            # Row axis is independent for the identity copy -> 'parallel'.
            # Subclasses that turn this axis into a reduction (accumulator
            # output) must switch it to 'arbitrary'.
            dimension_semantics=("parallel",),
            vmem_limit_bytes=_VMEM_LIMIT_BYTES,
        ),
        **kwargs,
    )(x2d)


class BaseComponent:
    """JAX/Pallas analogue of neuralprophet BaseComponent."""

    def __init__(self, n_forecasts, quantiles, id_list, device=None, donate_input=False):
        self.n_forecasts = n_forecasts
        self.quantiles = quantiles
        self.id_list = id_list
        self.device = device
        self.donate_input = donate_input

    def forward(self, t, meta=None):
        # t: (batch, n_forecasts) float; meta carries per-sample df_name (unused here).
        batch, n_forecasts = t.shape
        assert n_forecasts == self.n_forecasts

        total = batch * n_forecasts
        sublane = _min_sublane(t.dtype)

        # Fast path: the base contract is identity, and tiny / non-lane-divisible
        # inputs would pay a full custom-call launch + HBM read/write for nothing.
        if total < _KERNEL_MIN_ELEMS or total % LANE != 0:
            return t

        # Lane-dense, zero-copy repack: contiguous row-major reshape only.
        width = _pick_width(total, sublane)
        itemsize = jnp.dtype(t.dtype).itemsize
        rows = total // width
        row_tile = _pick_row_tile(rows, sublane, width, itemsize)

        x2d = t.reshape(rows, width)
        out2d = _identity_copy_2d(x2d, row_tile, donate=self.donate_input)
        return out2d.reshape(batch, n_forecasts)

    def __call__(self, t, meta=None):
        return self.forward(t, meta)


if __name__ == "__main__":
    key_small, key_large = jax.random.split(jax.random.PRNGKey(0))

    quantiles = [0.1, 0.5, 0.9]
    id_list = ["__df__"]

    # 1) Tiny demo at the module's natural scale: (batch=2, n_forecasts=8).
    #    Takes the fast path (identity contract, no pallas_call overhead).
    comp_small = BaseComponent(n_forecasts=8, quantiles=quantiles,
                               id_list=id_list, device=None)
    t_small = jax.random.uniform(key_small, (2, 8), dtype=jnp.float32)
    meta_small = {"df_name": ["__df__"] * 2}
    out_small = jax.block_until_ready(comp_small(t_small, meta_small))
    assert out_small.shape == t_small.shape and out_small.dtype == t_small.dtype
    assert bool(jnp.allclose(out_small, t_small))

    # 2) Lane-divisible input large enough to exercise the Pallas kernel path
    #    (1024x128 f32 -> repacked to (32, 4096), row_tile=16, 2 parallel blocks).
    comp_large = BaseComponent(n_forecasts=128, quantiles=quantiles,
                               id_list=id_list, device=None)
    t_large = jax.random.uniform(key_large, (1024, 128), dtype=jnp.float32)
    meta_large = {"df_name": ["__df__"] * 1024}
    out_large = jax.block_until_ready(comp_large(t_large, meta_large))
    assert out_large.shape == t_large.shape and out_large.dtype == t_large.dtype
    assert bool(jnp.allclose(out_large, t_large)), "base-contract identity mismatch"

    print("KERNEL_OK")
</pallas_src>

<mosaic_0001>
module attributes {stable_mosaic.version = 11 : i64} {
  func.func @_base_component_kernel(%arg0: i32, %arg1: memref<16x4096xf32, #tpu.memory_space<vmem>>, %arg2: memref<16x4096xf32, #tpu.memory_space<vmem>>) attributes {dimension_semantics = [#tpu.dimension_semantics<parallel>], iteration_bounds = array<i64: 2>, scalar_prefetch = 0 : i64, scratch_operands = 0 : i64, tpu.core_type = #tpu.core_type<tc>, window_params = [{transform_indices = @transform_0, window_bounds = array<i64: 16, 4096>}, {transform_indices = @transform_1, window_bounds = array<i64: 16, 4096>}]} {
    %c0 = arith.constant 0 : index
    %c0_0 = arith.constant 0 : index
    %0 = vector.load %arg1[%c0, %c0_0] : memref<16x4096xf32, #tpu.memory_space<vmem>>, vector<16x4096xf32>
    %c0_1 = arith.constant 0 : index
    %c0_2 = arith.constant 0 : index
    %1 = vector.load %arg2[%c0_1, %c0_2] : memref<16x4096xf32, #tpu.memory_space<vmem>>, vector<16x4096xf32>
    tpu.vector_store %arg2[%c0_1, %c0_2], %0 {strides = array<i32>} : memref<16x4096xf32, #tpu.memory_space<vmem>>, vector<16x4096xf32>,
    return
  }
  func.func @transform_0(%arg0: i32) -> (i32, i32) {
    %c0_i32 = arith.constant 0 : i32
    %c0_i32_0 = arith.constant 0 : i32
    return %arg0, %c0_i32 : i32, i32
  }
  func.func @transform_1(%arg0: i32) -> (i32, i32) {
    %c0_i32 = arith.constant 0 : i32
    %c0_i32_0 = arith.constant 0 : i32
    return %arg0, %c0_i32 : i32, i32
  }
}

</mosaic_0001>

<bundles_post_ra>
// kernel: tpu_custom_call.1
= control target key start
LH: loop header
LB: loop body
LE: loop exit
PB: predicated region body
PF: predicated region fallthrough
CT: control target
= control target key end

     0   :  { %6 = vsyncpa [#allocation3], 0  ;;  %s821_s0 = inlined_call_operand.hbm [shape: f32[32,4096], index: 0, kind: input, shape index: {}]   ;;  %s822_s1 = inlined_call_operand.hbm [shape: f32[32,4096], index: 1, kind: output, shape index: {}]  }
   0x1   :  { %8 = vsyncpa [#allocation3 + $0x1], 0 }
   0x2   :  { %9 = vsyncpa [#allocation4], 0 }
   0x3   :  { %11 = vsyncpa [#allocation4 + $0x1], 0  ;;  %s534_s6 = smov 0   ;;  %s536_s7 = smov 0  }
   0x4   :  { %s538_s8 = smov 0   ;;  %s540_s9 = smov 0  }
   0x5 LB: > { %s555_s10 = sadd.s32 4294967295, %s516_s9   ;;  %s354_s11 = sadd.s32 4294967294, %s516_s9   ;;  %s516_s9 = sphi %s540_s9, %s837_s9   ;;  %s512_s8 = sphi %s538_s8, %s836_s8   ;;  %s508_s7 = sphi %s536_s7, %s835_s7   ;;  %s504_s6 = sphi %s534_s6, %s834_s6  }
   0x6   : > { %s559_s12 = sadd.s32 1, %s516_s9   ;;  %s24_s13 = sadd.s32 1, %s512_s8 }
   0x7   : > { %s21_s14 = ssub.s32 %s516_s9, %s559_s12  ;;  %p31_p0 = scmp.ne.s32.totalorder %s512_s8, %s508_s7 }
   0x8   : > { %p22_p1 = scmp.eq.s32.totalorder %s21_s14, 0  ;;  %p32_p2 = scmp.eq.s32.totalorder %s516_s9, 0 }
   0x9   : > { %p37_p3 = scmp.ne.s32.totalorder %s508_s7, %s504_s6  ;;  %p38_p4 = scmp.eq.s32.totalorder %s555_s10, 0 }
   0xa   : > { %s571_s15 = scalar_select %p22_p1, %s512_s8, %s24_s13  }
   0xb   : > { %p573_p5 = por %p32_p2, %p31_p0  ;;  %p577_p6 = por %p38_p4, %p37_p3 }
   0xc   : > { %p61_p7 = scmp.eq.s32.totalorder %s555_s10, 1  ;;  %p67_p8 = scmp.eq.s32.totalorder %s354_s11, 1 }
   0xd   : > { %s826_s17 = scalar_select %p577_p6, 1, 0 }
   0xe   : > { %p386_p10 = scmp.lt.s32.totalorder %s516_s9, 2  ;;  %p584_p11 = por %p61_p7, %p31_p0 }
   0xf   : > { %p588_p12 = por %p67_p8, %p37_p3  ;;  %s87_s20 = sand.u32 1, %s512_s8  }
  0x10   : > { %s827_s18 = scalar_select %p584_p11, 1, 0 }
  0x11   : > { %s828_s19 = scalar_select %p588_p12, 1, 0 }
  0x12   : > { %s371_s21 = sshll.u32 %s516_s9, 13  ;;  %s357_s22 = sshll.u32 %s87_s20, 9 }
  0x13   : > { %s597_s25 = scalar_lea.hbm %s821_s0, %s371_s21  ;;  %s91_s26 = scalar_lea.vmem [#allocation2], %s357_s22 }
  0x14   : > { %s99_s27 = sshll.u32 %s91_s26, 4  ;;  %p601_p13 = pnand %p386_p10, %p573_p5  ;;  %s605_s27 = int_to_ptr.vmem [resolvable:$true] %s99_s27 }
  0x15   : > { %s607_s29 = scalar_lea.sflag [#allocation3], %s87_s20  ;;  %s424_s30 = scalar_lea.hbm %s597_s25, 8192 }
  0x16   : > { %p425_p0 = scmp.ne.s32.totalorder %s597_s25, %s424_s30  ;;  %p426_p1 = pneg %p601_p13 }
  0x17   : > { %s429_s4 = scalar_lea.hbm %s821_s0, 16384  ;;  %p430_p4 = scmp.lt.s32.totalorder %s597_s25, %s821_s0 }
  0x18   : > { %p427_p2 = pnand %p426_p1, %p425_p0  ;;  %p431_p5 = scmp.lt.s32.totalorder %s429_s4, %s424_s30 }
  0x1a   : > { %p428_p3 = pneg %p427_p2  ;;  %p432_p7 = por %p431_p5, %p430_p4 }
  0x1c   : > { %p433_p8 = pnand %p432_p7, %p428_p3 }
  0x1e   : > { %436 = shalt.err (!%p433_p8)
}
  0x1f   : > { %s437_s13 = scalar_lea.vmem %s605_s27, 8192  ;;  %s518_s14 = smov [#allocation2]  }
  0x20   : > { %p438_p10 = scmp.ne.s32.totalorder %s605_s27, %s437_s13  ;;  %s442_s16 = sshll.u32 %s518_s14, 4  ;;  %s443_s16 = int_to_ptr.vmem [resolvable:$false] %s442_s16 }
  0x21   : > { %s444_s20 = scalar_lea.vmem %s443_s16, 16384  ;;  %p445_p2 = scmp.lt.s32.totalorder %s605_s27, %s443_s16 }
  0x22   : > { %p440_p9 = pnand %p438_p10, %p426_p1  ;;  %p446_p12 = scmp.lt.s32.totalorder %s444_s20, %s437_s13 }
  0x24   : > { %p441_p0 = pneg %p440_p9  ;;  %p447_p11 = por %p446_p12, %p445_p2 }
  0x26   : > { %p448_p6 = pnand %p447_p11, %p441_p0 }
  0x28   : > { %451 = shalt.err (!%p448_p6)
}
  0x29   : > { %s519_s21 = smov 4096   ;;  %s520_s22 = smov 256  }
  0x2a   : > { %381 = dma.hbm_to_vmem [thread:$0]  (!%p601_p13), %s597_s25, 8192, %s605_s27, %s607_s29, %s519_s21, %s519_s21, %s520_s22  }
  0x2b   : > { %p361_p9 = scmp.ge.s32.totalorder %s516_s9, 1  ;;  %p107_p1 = scmp.lt.s32.totalorder %s516_s9, 3 }
  0x2d   : > { %p108_p3 = pnand %p361_p9, %p107_p1 }
  0x2e   : > { %s631_s23 = sand.u32 (!%p108_p3), 1, %s508_s7   ;;  %p830_p6 = scmp.ne.s32.totalorder (!%p108_p3), %s826_s17, 0 }
  0x2f   : > { %111 = sbr.rel (%p108_p3) target bundleno = 99 (0x63), region = 24  ;;  %s362_s24 = sshll.u32 (!%p108_p3), %s631_s23, 9 }
  0x30   : > { %s114_s26 = scalar_lea.sflag (!%p108_p3), [#allocation3], %s631_s23  ;;  %s635_s30 = scalar_lea.vmem (!%p108_p3), [#allocation2], %s362_s24 }
  0x34   : > { %495 = dma.done.wait (%p830_p6), %s114_s26, 8192  }
  0x35   : > { %497 = vsyncadd (%p830_p6), %s114_s26, 4294959104  ;;  %v138_v0 = vld [vmem:[%s635_s30] sm:$0xff]  ;;  %v139_v1 = vld [vmem:[%s635_s30 + $0x8] sm:$0xff]  ;;  %s644_s25 = scalar_lea.vmem [#allocation5], %s362_s24  ;;  %s373_s17 = sshll.u32 %s555_s10, 13 }
  0x36   : > { %v140_v2 = vld [vmem:[%s635_s30 + $0x10] sm:$0xff]  ;;  %202 = vst [vmem:[%s644_s25] sm:$0xff] %v138_v0  ;;  %203 = vst [vmem:[%s644_s25 + $0x8] sm:$0xff] %v139_v1  ;;  %v141_v3 = vld [vmem:[%s635_s30 + $0x18] sm:$0xff]  ;;  %s281_s27 = sshll.u32 %s644_s25, 4  ;;  %s765_s29 = scalar_lea.hbm %s822_s1, %s373_s17  ;;  %s767_s27 = int_to_ptr.vmem [resolvable:$true] %s281_s27 }
  0x37   : > { %204 = vst [vmem:[%s644_s25 + $0x10] sm:$0xff] %v140_v2  ;;  %v142_v4 = vld [vmem:[%s635_s30 + $0x20] sm:$0xff]  ;;  %v143_v5 = vld [vmem:[%s635_s30 + $0x28] sm:$0xff]  ;;  %205 = vst [vmem:[%s644_s25 + $0x18] sm:$0xff] %v141_v3  ;;  %s267_s2 = scalar_lea.sflag [#allocation4], %s631_s23  ;;  %s452_s3 = scalar_lea.vmem %s767_s27, 8192 }
  0x38   : > { %206 = vst [vmem:[%s644_s25 + $0x20] sm:$0xff] %v142_v4  ;;  %207 = vst [vmem:[%s644_s25 + $0x28] sm:$0xff] %v143_v5  ;;  %v144_v6 = vld [vmem:[%s635_s30 + $0x30] sm:$0xff]  ;;  %v145_v7 = vld [vmem:[%s635_s30 + $0x38] sm:$0xff]  ;;  %p453_p11 = scmp.ne.s32.totalorder %s767_s27, %s452_s3  ;;  %p831_p12 = scmp.ne.s32.totalorder %s827_s18, 0 }
  0x39   : > { %v146_v8 = vld [vmem:[%s635_s30 + $0x40] sm:$0xff]  ;;  %208 = vst [vmem:[%s644_s25 + $0x30] sm:$0xff] %v144_v6  ;;  %209 = vst [vmem:[%s644_s25 + $0x38] sm:$0xff] %v145_v7  ;;  %v147_v9 = vld [vmem:[%s635_s30 + $0x48] sm:$0xff]  ;;  %s521_s4 = smov [#allocation5]  }
  0x3a   : > { %210 = vst [vmem:[%s644_s25 + $0x40] sm:$0xff] %v146_v8  ;;  %v148_v10 = vld [vmem:[%s635_s30 + $0x50] sm:$0xff]  ;;  %v149_v11 = vld [vmem:[%s635_s30 + $0x58] sm:$0xff]  ;;  %211 = vst [vmem:[%s644_s25 + $0x48] sm:$0xff] %v147_v9  ;;  %p454_p13 = pnand %p453_p11, %p831_p12  ;;  %s456_s5 = sshll.u32 %s521_s4, 4  ;;  %s457_s5 = int_to_ptr.vmem [resolvable:$false] %s456_s5 }
  0x3b   : > { %212 = vst [vmem:[%s644_s25 + $0x50] sm:$0xff] %v148_v10  ;;  %213 = vst [vmem:[%s644_s25 + $0x58] sm:$0xff] %v149_v11  ;;  %v150_v12 = vld [vmem:[%s635_s30 + $0x60] sm:$0xff]  ;;  %v151_v13 = vld [vmem:[%s635_s30 + $0x68] sm:$0xff]  ;;  %s458_s11 = scalar_lea.vmem %s457_s5, 16384  ;;  %p459_p5 = scmp.lt.s32.totalorder %s767_s27, %s457_s5 }
  0x3c   : > { %v152_v14 = vld [vmem:[%s635_s30 + $0x70] sm:$0xff]  ;;  %214 = vst [vmem:[%s644_s25 + $0x60] sm:$0xff] %v150_v12  ;;  %215 = vst [vmem:[%s644_s25 + $0x68] sm:$0xff] %v151_v13  ;;  %v153_v15 = vld [vmem:[%s635_s30 + $0x78] sm:$0xff]  ;;  %p455_p4 = pneg %p454_p13  ;;  %p460_p7 = scmp.lt.s32.totalorder %s458_s11, %s452_s3 }
  0x3d   : > { %216 = vst [vmem:[%s644_s25 + $0x70] sm:$0xff] %v152_v14  ;;  %v154_v16 = vld [vmem:[%s635_s30 + $0x80] sm:$0xff]  ;;  %v155_v17 = vld [vmem:[%s635_s30 + $0x88] sm:$0xff]  ;;  %217 = vst [vmem:[%s644_s25 + $0x78] sm:$0xff] %v153_v15 }
  0x3e   : > { %218 = vst [vmem:[%s644_s25 + $0x80] sm:$0xff] %v154_v16  ;;  %219 = vst [vmem:[%s644_s25 + $0x88] sm:$0xff] %v155_v17  ;;  %v156_v18 = vld [vmem:[%s635_s30 + $0x90] sm:$0xff]  ;;  %v157_v19 = vld [vmem:[%s635_s30 + $0x98] sm:$0xff]  ;;  %p461_p8 = por %p460_p7, %p459_p5 }
  0x3f   : > { %v158_v20 = vld [vmem:[%s635_s30 + $0xa0] sm:$0xff]  ;;  %220 = vst [vmem:[%s644_s25 + $0x90] sm:$0xff] %v156_v18  ;;  %221 = vst [vmem:[%s644_s25 + $0x98] sm:$0xff] %v157_v19  ;;  %v159_v21 = vld [vmem:[%s635_s30 + $0xa8] sm:$0xff] }
  0x40   : > { %222 = vst [vmem:[%s644_s25 + $0xa0] sm:$0xff] %v158_v20  ;;  %v160_v22 = vld [vmem:[%s635_s30 + $0xb0] sm:$0xff]  ;;  %v161_v23 = vld [vmem:[%s635_s30 + $0xb8] sm:$0xff]  ;;  %223 = vst [vmem:[%s644_s25 + $0xa8] sm:$0xff] %v159_v21  ;;  %p462_p10 = pnand %p461_p8, %p455_p4 }
  0x41   : > { %224 = vst [vmem:[%s644_s25 + $0xb0] sm:$0xff] %v160_v22  ;;  %225 = vst [vmem:[%s644_s25 + $0xb8] sm:$0xff] %v161_v23  ;;  %v162_v24 = vld [vmem:[%s635_s30 + $0xc0] sm:$0xff]  ;;  %v163_v25 = vld [vmem:[%s635_s30 + $0xc8] sm:$0xff] }
  0x42   : > { %v164_v26 = vld [vmem:[%s635_s30 + $0xd0] sm:$0xff]  ;;  %226 = vst [vmem:[%s644_s25 + $0xc0] sm:$0xff] %v162_v24  ;;  %227 = vst [vmem:[%s644_s25 + $0xc8] sm:$0xff] %v163_v25  ;;  %v165_v27 = vld [vmem:[%s635_s30 + $0xd8] sm:$0xff] }
  0x43   : > { %228 = vst [vmem:[%s644_s25 + $0xd0] sm:$0xff] %v164_v26  ;;  %v166_v28 = vld [vmem:[%s635_s30 + $0xe0] sm:$0xff]  ;;  %v167_v29 = vld [vmem:[%s635_s30 + $0xe8] sm:$0xff]  ;;  %229 = vst [vmem:[%s644_s25 + $0xd8] sm:$0xff] %v165_v27 }
  0x44   : > { %230 = vst [vmem:[%s644_s25 + $0xe0] sm:$0xff] %v166_v28  ;;  %231 = vst [vmem:[%s644_s25 + $0xe8] sm:$0xff] %v167_v29  ;;  %v168_v30 = vld [vmem:[%s635_s30 + $0xf0] sm:$0xff]  ;;  %v169_v31 = vld [vmem:[%s635_s30 + $0xf8] sm:$0xff] }
  0x45   : > { %v170_v32 = vld [vmem:[%s635_s30 + $0x100] sm:$0xff]  ;;  %232 = vst [vmem:[%s644_s25 + $0xf0] sm:$0xff] %v168_v30  ;;  %233 = vst [vmem:[%s644_s25 + $0xf8] sm:$0xff] %v169_v31  ;;  %v171_v33 = vld [vmem:[%s635_s30 + $0x108] sm:$0xff] }
  0x46   : > { %234 = vst [vmem:[%s644_s25 + $0x100] sm:$0xff] %v170_v32  ;;  %v172_v34 = vld [vmem:[%s635_s30 + $0x110] sm:$0xff]  ;;  %v173_v35 = vld [vmem:[%s635_s30 + $0x118] sm:$0xff]  ;;  %235 = vst [vmem:[%s644_s25 + $0x108] sm:$0xff] %v171_v33 }
  0x47   : > { %236 = vst [vmem:[%s644_s25 + $0x110] sm:$0xff] %v172_v34  ;;  %237 = vst [vmem:[%s644_s25 + $0x118] sm:$0xff] %v173_v35  ;;  %v174_v36 = vld [vmem:[%s635_s30 + $0x120] sm:$0xff]  ;;  %v175_v37 = vld [vmem:[%s635_s30 + $0x128] sm:$0xff] }
  0x48   : > { %v176_v38 = vld [vmem:[%s635_s30 + $0x130] sm:$0xff]  ;;  %238 = vst [vmem:[%s644_s25 + $0x120] sm:$0xff] %v174_v36  ;;  %239 = vst [vmem:[%s644_s25 + $0x128] sm:$0xff] %v175_v37  ;;  %v177_v39 = vld [vmem:[%s635_s30 + $0x138] sm:$0xff] }
  0x49   : > { %240 = vst [vmem:[%s644_s25 + $0x130] sm:$0xff] %v176_v38  ;;  %v178_v40 = vld [vmem:[%s635_s30 + $0x140] sm:$0xff]  ;;  %v179_v41 = vld [vmem:[%s635_s30 + $0x148] sm:$0xff]  ;;  %241 = vst [vmem:[%s644_s25 + $0x138] sm:$0xff] %v177_v39 }
  0x4a   : > { %242 = vst [vmem:[%s644_s25 + $0x140] sm:$0xff] %v178_v40  ;;  %243 = vst [vmem:[%s644_s25 + $0x148] sm:$0xff] %v179_v41  ;;  %v180_v42 = vld [vmem:[%s635_s30 + $0x150] sm:$0xff]  ;;  %v181_v43 = vld [vmem:[%s635_s30 + $0x158] sm:$0xff] }
  0x4b   : > { %v182_v44 = vld [vmem:[%s635_s30 + $0x160] sm:$0xff]  ;;  %244 = vst [vmem:[%s644_s25 + $0x150] sm:$0xff] %v180_v42  ;;  %245 = vst [vmem:[%s644_s25 + $0x158] sm:$0xff] %v181_v43  ;;  %v183_v45 = vld [vmem:[%s635_s30 + $0x168] sm:$0xff] }
  0x4c   : > { %246 = vst [vmem:[%s644_s25 + $0x160] sm:$0xff] %v182_v44  ;;  %v184_v46 = vld [vmem:[%s635_s30 + $0x170] sm:$0xff]  ;;  %v185_v47 = vld [vmem:[%s635_s30 + $0x178] sm:$0xff]  ;;  %247 = vst [vmem:[%s644_s25 + $0x168] sm:$0xff] %v183_v45 }
  0x4d   : > { %248 = vst [vmem:[%s644_s25 + $0x170] sm:$0xff] %v184_v46  ;;  %249 = vst [vmem:[%s644_s25 + $0x178] sm:$0xff] %v185_v47  ;;  %v186_v48 = vld [vmem:[%s635_s30 + $0x180] sm:$0xff]  ;;  %v187_v49 = vld [vmem:[%s635_s30 + $0x188] sm:$0xff] }
  0x4e   : > { %v188_v50 = vld [vmem:[%s635_s30 + $0x190] sm:$0xff]  ;;  %250 = vst [vmem:[%s644_s25 + $0x180] sm:$0xff] %v186_v48  ;;  %251 = vst [vmem:[%s644_s25 + $0x188] sm:$0xff] %v187_v49  ;;  %v189_v51 = vld [vmem:[%s635_s30 + $0x198] sm:$0xff] }
  0x4f   : > { %252 = vst [vmem:[%s644_s25 + $0x190] sm:$0xff] %v188_v50  ;;  %v190_v52 = vld [vmem:[%s635_s30 + $0x1a0] sm:$0xff]  ;;  %v191_v53 = vld [vmem:[%s635_s30 + $0x1a8] sm:$0xff]  ;;  %253 = vst [vmem:[%s644_s25 + $0x198] sm:$0xff] %v189_v51 }
  0x50   : > { %254 = vst [vmem:[%s644_s25 + $0x1a0] sm:$0xff] %v190_v52  ;;  %255 = vst [vmem:[%s644_s25 + $0x1a8] sm:$0xff] %v191_v53  ;;  %v192_v54 = vld [vmem:[%s635_s30 + $0x1b0] sm:$0xff]  ;;  %v193_v55 = vld [vmem:[%s635_s30 + $0x1b8] sm:$0xff] }
  0x51   : > { %v194_v56 = vld [vmem:[%s635_s30 + $0x1c0] sm:$0xff]  ;;  %256 = vst [vmem:[%s644_s25 + $0x1b0] sm:$0xff] %v192_v54  ;;  %257 = vst [vmem:[%s644_s25 + $0x1b8] sm:$0xff] %v193_v55  ;;  %v195_v57 = vld [vmem:[%s635_s30 + $0x1c8] sm:$0xff] }
  0x52   : > { %258 = vst [vmem:[%s644_s25 + $0x1c0] sm:$0xff] %v194_v56  ;;  %v196_v58 = vld [vmem:[%s635_s30 + $0x1d0] sm:$0xff]  ;;  %v197_v59 = vld [vmem:[%s635_s30 + $0x1d8] sm:$0xff]  ;;  %259 = vst [vmem:[%s644_s25 + $0x1c8] sm:$0xff] %v195_v57 }
  0x53   : > { %260 = vst [vmem:[%s644_s25 + $0x1d0] sm:$0xff] %v196_v58  ;;  %261 = vst [vmem:[%s644_s25 + $0x1d8] sm:$0xff] %v197_v59  ;;  %v198_v60 = vld [vmem:[%s635_s30 + $0x1e0] sm:$0xff]  ;;  %v199_v61 = vld [vmem:[%s635_s30 + $0x1e8] sm:$0xff] }
  0x54   : > { %v200_v62 = vld [vmem:[%s635_s30 + $0x1f0] sm:$0xff]  ;;  %262 = vst [vmem:[%s644_s25 + $0x1e0] sm:$0xff] %v198_v60  ;;  %263 = vst [vmem:[%s644_s25 + $0x1e8] sm:$0xff] %v199_v61  ;;  %v201_v63 = vld [vmem:[%s635_s30 + $0x1f8] sm:$0xff] }
  0x55   : > { %264 = vst [vmem:[%s644_s25 + $0x1f0] sm:$0xff] %v200_v62  ;;  %265 = vst [vmem:[%s644_s25 + $0x1f8] sm:$0xff] %v201_v63 }
  0x56   : > { %465 = shalt.err (!%p462_p10)
}
  0x57   : > { %s466_s13 = scalar_lea.hbm %s765_s29, 8192  ;;  %s470_s20 = scalar_lea.hbm %s822_s1, 16384 }
  0x58   : > { %p467_p0 = scmp.ne.s32.totalorder %s765_s29, %s466_s13  ;;  %p471_p1 = scmp.lt.s32.totalorder %s765_s29, %s822_s1 }
  0x59   : > { %p472_p3 = scmp.lt.s32.totalorder %s470_s20, %s466_s13 }
  0x5a   : > { %p468_p2 = pnand %p467_p0, %p831_p12 }
  0x5b   : > { %p473_p6 = por %p472_p3, %p471_p1 }
  0x5c   : > { %p469_p9 = pneg %p468_p2 }
  0x5e   : > { %p474_p11 = pnand %p473_p6, %p469_p9 }
  0x60   : > { %477 = shalt.err (!%p474_p11)
}
  0x61   : > { %s522_s24 = smov 4096   ;;  %s523_s26 = smov 256  }
  0x62   : > { %376 = dma.vmem_to_hbm [thread:$0]  (%p831_p12), %s767_s27, 8192, %s765_s29, %s267_s2, %s522_s24, %s522_s24, %s523_s26  }
  0x63 PF: > { %s296_s30 = sand.u32 1, %s504_s6   ;;  %p832_p13 = scmp.ne.s32.totalorder %s828_s19, 0 }
  0x64   : > { %p833_p4 = scmp.ge.s32.totalorder %s516_s9, 2  ;;  %s297_s25 = scalar_lea.sflag [#allocation4], %s296_s30 }
  0x66   : > { %p383_p5 = pnand %p833_p4, %p832_p13 }
  0x68   : > { %p384_p7 = pneg %p383_p5 }
  0x6a   : > { %499 = dma.done.wait (%p384_p7), %s297_s25, 8192  }
  0x6b   : > { %501 = vsyncadd (%p384_p7), %s297_s25, 4294959104  ;;  %p14_p8 = scmp.ge.s32.totalorder %s559_s12, 4   ;;  %s834_s6 = smov %s508_s7 }
  0x6c   : > { %s835_s7 = smov %s512_s8  ;;  %s836_s8 = smov %s571_s15 }
  0x6d   : > { %s837_s9 = smov %s559_s12  ;;  %16 = sbr.rel (!%p14_p8) target bundleno = 5 (0x5), region = 69 }
  0x72   :  { %302 = vsyncpa [#allocation3], 1 }
  0x73   :  { %304 = vsyncpa [#allocation3 + $0x1], 1 }
  0x74   :  { %305 = vsyncpa [#allocation4], 1 }
  0x75   :  { %307 = vsyncpa [#allocation4 + $0x1], 1 }

</bundles_post_ra>
